<compile_context>
chip_gen: v7x
topology: tpu7x:2x2x1
jax: 0.10.0
libtpu: 0.0.40
codegen_flags: <defaults>
</compile_context>

<pallas_src>
import numpy as np
import jax
import jax.numpy as jnp
from jax.experimental import pallas as pl
from jax.experimental.pallas import tpu as pltpu


def _round_up(n, m):
    return ((n + m - 1) // m) * m


# ------------------------------ fused kernel -------------------------------- #

def _make_kernel(fs_max, E, P_pad, K, T_pad, BM):
    """kernel(x, conv_pack, hg_pack, head_pack, out, xw_scratch)."""

    def kernel(x_ref, conv_ref, hg_ref, head_ref, o_ref, xw_ref):
        # ---- im2col: pack the fs_max shifted taps into one (BM*P_pad, K) slab ----
        for k in range(fs_max):                           # static, tiny
            tap = x_ref[:, pl.ds(k, P_pad), :]            # (BM, P_pad, E)
            xw_ref[:, k * E:(k + 1) * E] = tap.reshape(BM * P_pad, E)

        # ---- unpack conv slab (static row slices) ----
        w_conv = conv_ref[0:K, :]                         # (K, T_pad)
        mask = conv_ref[K:K + P_pad, :]                   # (P_pad, T_pad) 0/1 valid-position mask
        b_conv = conv_ref[K + P_pad:K + P_pad + 1, :]     # (1, T_pad)

        # ---- all branches, all taps: ONE matmul, bias + ReLU + mask + max-pool ----
        s = jnp.dot(xw_ref[...], w_conv,
                    preferred_element_type=jnp.float32) + b_conv   # (BM*P_pad, T_pad)
        s = jnp.maximum(s, 0.0)
        s3 = s.reshape(BM, P_pad, T_pad)
        s3 = s3 * jnp.broadcast_to(mask, (BM, P_pad, T_pad))        # zero invalid positions
        feat = jnp.max(s3, axis=1)                                  # (BM, T_pad) == concat of branches

        # ---- highway: fused [W_H || W_G] matmul (N = 2*T_pad) ----
        w_hg = hg_ref[0:T_pad, :]                         # (T_pad, 2*T_pad)
        b_hg = hg_ref[T_pad:T_pad + 1, :]                 # (1, 2*T_pad)
        hg = jnp.dot(feat, w_hg, preferred_element_type=jnp.float32) + b_hg
        g = jnp.maximum(hg[:, :T_pad], 0.0)
        t = jax.nn.sigmoid(hg[:, T_pad:])
        h = t * g + (1.0 - t) * feat

        # TODO(synk): nn.Dropout(0.5) treated as identity (eval semantics); training-mode
        # random masking/scaling is not modeled.

        # ---- output head + sigmoid (lane-dense (BM, C_pad) store) ----
        w_o = head_ref[0:T_pad, :]                        # (T_pad, C_pad)
        b_o = head_ref[T_pad:T_pad + 1, :]                # (1, C_pad)
        y = jnp.dot(h, w_o, preferred_element_type=jnp.float32) + b_o
        o_ref[...] = jax.nn.sigmoid(y)

    return kernel


# --------------------------------- model ------------------------------------ #

class DiscriminatorPallas:
    def __init__(self, sequence_length, num_classes, vocab_size, embedding_size,
                 filter_sizes, num_filters, key):
        self.sequence_length = sequence_length
        self.num_classes = num_classes
        self.vocab_size = vocab_size          # unused in forward (kept for fidelity)
        self.embedding_size = embedding_size
        self.filter_sizes = tuple(filter_sizes)
        self.num_filters = tuple(num_filters)

        T = sum(num_filters)
        self.total_features = T
        self.T_pad = _round_up(max(T, 1), 128)
        self.C_pad = _round_up(max(num_classes, 1), 128)

        self.fs_max = max(self.filter_sizes)
        min_fs = min(self.filter_sizes)
        P_max = sequence_length - min_fs + 1
        self.P_pad = _round_up(P_max, 8)                     # sublane-aligned positions
        self.S_pad = self.P_pad + self.fs_max - 1            # so every tap slice is in-bounds
        self.K = self.fs_max * embedding_size                # fused contraction dim

        keys = jax.random.split(key, 2 * len(filter_sizes) + 6)
        ki = 0

        # --- raw (PyTorch-layout) parameters, kept for the reference check ---
        self.raw_conv = []
        for fs, F in zip(self.filter_sizes, self.num_filters):
            W = 0.1 * jax.random.normal(keys[ki], (F, 1, fs, embedding_size), jnp.float32); ki += 1
            b = 0.1 * jax.random.normal(keys[ki], (F,), jnp.float32); ki += 1
            self.raw_conv.append((W, b))
        self.raw_Wh = 0.1 * jax.random.normal(keys[ki], (T, T), jnp.float32); ki += 1
        self.raw_bh = 0.1 * jax.random.normal(keys[ki], (T,), jnp.float32); ki += 1
        self.raw_Wg = 0.1 * jax.random.normal(keys[ki], (T, T), jnp.float32); ki += 1
        self.raw_bg = 0.1 * jax.random.normal(keys[ki], (T,), jnp.float32); ki += 1
        self.raw_Wo = 0.1 * jax.random.normal(keys[ki], (num_classes, T), jnp.float32); ki += 1
        self.raw_bo = 0.1 * jax.random.normal(keys[ki], (num_classes,), jnp.float32); ki += 1

        # --- conv_pack: [tap weights (K rows) | position mask (P_pad rows) | bias (1 row)] ---
        conv_pack = np.zeros((self.K + self.P_pad + 1, self.T_pad), np.float32)
        off = 0
        for (fs, F), (W, b) in zip(zip(self.filter_sizes, self.num_filters), self.raw_conv):
            Wn = np.asarray(W)                               # (F, 1, fs, E)
            for k in range(fs):                              # tap-k rows; taps >= fs stay zero
                conv_pack[k * embedding_size:(k + 1) * embedding_size, off:off + F] = Wn[:, 0, k, :].T
            P_i = sequence_length - fs + 1                   # valid positions for this branch
            conv_pack[self.K:self.K + P_i, off:off + F] = 1.0
            conv_pack[self.K + self.P_pad, off:off + F] = np.asarray(b)
            off += F
        self.conv_pack = jnp.asarray(conv_pack)

        # --- hg_pack: [W_H.T || W_G.T ; b_H || b_G] (one fused highway matmul) ---
        hg_pack = np.zeros((self.T_pad + 1, 2 * self.T_pad), np.float32)
        hg_pack[:T, :T] = np.asarray(self.raw_Wh).T
        hg_pack[self.T_pad, :T] = np.asarray(self.raw_bh)
        hg_pack[:T, self.T_pad:self.T_pad + T] = np.asarray(self.raw_Wg).T
        hg_pack[self.T_pad, self.T_pad:self.T_pad + T] = np.asarray(self.raw_bg)
        self.hg_pack = jnp.asarray(hg_pack)

        # --- head_pack: [W_out.T ; b_out] ---
        head_pack = np.zeros((self.T_pad + 1, self.C_pad), np.float32)
        head_pack[:T, :num_classes] = np.asarray(self.raw_Wo).T
        head_pack[self.T_pad, :num_classes] = np.asarray(self.raw_bo)
        self.head_pack = jnp.asarray(head_pack)

    def __call__(self, x_nchw):
        # x_nchw: (B, 1, S, E) float32 — same layout as the PyTorch module's input.
        x = jnp.squeeze(x_nchw, axis=1).astype(jnp.float32)          # (B, S, E)
        B, S, E = x.shape
        assert S == self.sequence_length and E == self.embedding_size

        # Batch tiling: sublane-aligned block, parallel grid over batch blocks.
        BM = 256 if B > 256 else _round_up(B, 8)
        B_pad = _round_up(B, BM)
        n_blocks = B_pad // BM

        x_pad = jnp.zeros((B_pad, self.S_pad, E), jnp.float32).at[:B, :S, :].set(x)

        kernel = _make_kernel(self.fs_max, E, self.P_pad, self.K, self.T_pad, BM)

        flops = 2 * B_pad * (self.P_pad * self.K * self.T_pad
                             + self.T_pad * 2 * self.T_pad
                             + self.T_pad * self.C_pad)
        transcendentals = B_pad * (self.T_pad + self.C_pad)
        bytes_accessed = 4 * (x_pad.size + self.conv_pack.size + self.hg_pack.size
                              + self.head_pack.size + B_pad * self.C_pad)

        y_pad = pl.pallas_call(
            kernel,
            out_shape=jax.ShapeDtypeStruct((B_pad, self.C_pad), jnp.float32),
            grid=(n_blocks,),
            in_specs=[
                pl.BlockSpec((BM, self.S_pad, E), lambda b: (b, 0, 0)),
                pl.BlockSpec(self.conv_pack.shape, lambda b: (0, 0)),
                pl.BlockSpec(self.hg_pack.shape, lambda b: (0, 0)),
                pl.BlockSpec(self.head_pack.shape, lambda b: (0, 0)),
            ],
            out_specs=pl.BlockSpec((BM, self.C_pad), lambda b: (b, 0)),
            scratch_shapes=[pltpu.VMEM((BM * self.P_pad, self.K), jnp.float32)],
            compiler_params=pltpu.CompilerParams(dimension_semantics=("parallel",)),
            cost_estimate=pl.CostEstimate(flops=int(flops),
                                          transcendentals=int(transcendentals),
                                          bytes_accessed=int(bytes_accessed)),
        )(x_pad, self.conv_pack, self.hg_pack, self.head_pack)

        # TODO(synk): torch.squeeze with B == 1 would yield shape (num_classes,) in
        # PyTorch; we always return (B, num_classes).
        return y_pad[:B, :self.num_classes]


# ---------------------------- pure-JAX reference ----------------------------- #

def _reference_forward(model, x_nchw):
    """PyTorch-faithful math from the raw (unpacked, unpadded) weights."""
    hi = jax.lax.Precision.HIGHEST
    x = x_nchw[:, 0].astype(jnp.float32)                    # (B, S, E)
    B, S, E = x.shape
    feats = []
    for (fs, F), (W, b) in zip(zip(model.filter_sizes, model.num_filters), model.raw_conv):
        P = S - fs + 1
        win = jnp.stack([x[:, p:p + fs, :] for p in range(P)], axis=1)   # (B, P, fs, E)
        out = jnp.einsum('bpke,cke->bpc', win, W[:, 0], precision=hi) + b
        out = jnp.maximum(out, 0.0)
        feats.append(jnp.max(out, axis=1))                  # (B, F)
    feat = jnp.concatenate(feats, axis=-1)                  # (B, T)
    g = jnp.maximum(jnp.dot(feat, model.raw_Wh.T, precision=hi) + model.raw_bh, 0.0)
    t = jax.nn.sigmoid(jnp.dot(feat, model.raw_Wg.T, precision=hi) + model.raw_bg)
    h = t * g + (1.0 - t) * feat
    y = jax.nn.sigmoid(jnp.dot(h, model.raw_Wo.T, precision=hi) + model.raw_bo)
    return y


# ----------------------------------- main ------------------------------------ #

if __name__ == "__main__":
    key = jax.random.PRNGKey(0)
    k_param, k_input = jax.random.split(key)

    # Small, module-consistent shapes.
    batch = 2
    sequence_length = 8
    embedding_size = 16
    vocab_size = 20          # unused in forward (kept for fidelity)
    num_classes = 2
    filter_sizes = (2, 3)
    num_filters = (8, 16)    # total_features = 24 (padded to 128 inside)

    model = DiscriminatorPallas(sequence_length, num_classes, vocab_size,
                                embedding_size, filter_sizes, num_filters, k_param)

    x = jax.random.normal(k_input, (batch, 1, sequence_length, embedding_size),
                          jnp.float32)

    y = jax.block_until_ready(model(x))
    assert y.shape == (batch, num_classes), y.shape
    assert bool(jnp.all(jnp.isfinite(y)))
    assert bool(jnp.all((y >= 0.0) & (y <= 1.0)))            # sigmoid output range

    y_ref = jax.block_until_ready(_reference_forward(model, x))
    assert bool(jnp.allclose(y, y_ref, atol=5e-3, rtol=5e-3)), (y, y_ref)

    print("KERNEL_OK")
</pallas_src>

<mosaic_0001>
module attributes {stable_mosaic.version = 11 : i64} {
  func.func @kernel(%arg0: i32, %arg1: memref<8x10x16xf32, #tpu.memory_space<vmem>>, %arg2: memref<57x128xf32, #tpu.memory_space<vmem>>, %arg3: memref<129x256xf32, #tpu.memory_space<vmem>>, %arg4: memref<129x128xf32, #tpu.memory_space<vmem>>, %arg5: memref<8x128xf32, #tpu.memory_space<vmem>>, %arg6: memref<64x48xf32, #tpu.memory_space<vmem>>) attributes {dimension_semantics = [#tpu.dimension_semantics<parallel>], iteration_bounds = array<i64: 1>, scalar_prefetch = 0 : i64, scratch_operands = 1 : i64, tpu.core_type = #tpu.core_type<tc>, window_params = [{transform_indices = @transform_0, window_bounds = array<i64: 8, 10, 16>}, {pipeline_mode = #tpu.pipeline_mode<synchronous>, transform_indices = @transform_1, window_bounds = array<i64: 57, 128>}, {pipeline_mode = #tpu.pipeline_mode<synchronous>, transform_indices = @transform_2, window_bounds = array<i64: 129, 256>}, {pipeline_mode = #tpu.pipeline_mode<synchronous>, transform_indices = @transform_3, window_bounds = array<i64: 129, 128>}, {transform_indices = @transform_4, window_bounds = array<i64: 8, 128>}]} {
    %c0 = arith.constant 0 : index
    %c0_0 = arith.constant 0 : index
    %c0_1 = arith.constant 0 : index
    %0 = vector.load %arg1[%c0, %c0_0, %c0_1] : memref<8x10x16xf32, #tpu.memory_space<vmem>>, vector<8x8x16xf32>
    %1 = vector.shape_cast %0 : vector<8x8x16xf32> to vector<64x16xf32>
    %c0_2 = arith.constant 0 : index
    %c0_3 = arith.constant 0 : index
    %2 = vector.load %arg6[%c0_2, %c0_3] : memref<64x48xf32, #tpu.memory_space<vmem>>, vector<64x16xf32>
    tpu.vector_store %arg6[%c0_2, %c0_3], %1 {strides = array<i32>} : memref<64x48xf32, #tpu.memory_space<vmem>>, vector<64x16xf32>,
    %c0_4 = arith.constant 0 : index
    %c1 = arith.constant 1 : index
    %c0_5 = arith.constant 0 : index
    %3 = vector.load %arg1[%c0_4, %c1, %c0_5] : memref<8x10x16xf32, #tpu.memory_space<vmem>>, vector<8x8x16xf32>
    %4 = vector.shape_cast %3 : vector<8x8x16xf32> to vector<64x16xf32>
    %c0_6 = arith.constant 0 : index
    %c16 = arith.constant 16 : index
    %5 = vector.load %arg6[%c0_6, %c16] : memref<64x48xf32, #tpu.memory_space<vmem>>, vector<64x16xf32>
    tpu.vector_store %arg6[%c0_6, %c16], %4 {strides = array<i32>} : memref<64x48xf32, #tpu.memory_space<vmem>>, vector<64x16xf32>,
    %c0_7 = arith.constant 0 : index
    %c2 = arith.constant 2 : index
    %c0_8 = arith.constant 0 : index
    %6 = vector.load %arg1[%c0_7, %c2, %c0_8] : memref<8x10x16xf32, #tpu.memory_space<vmem>>, vector<8x8x16xf32>
    %7 = vector.shape_cast %6 : vector<8x8x16xf32> to vector<64x16xf32>
    %c0_9 = arith.constant 0 : index
    %c32 = arith.constant 32 : index
    %8 = vector.load %arg6[%c0_9, %c32] : memref<64x48xf32, #tpu.memory_space<vmem>>, vector<64x16xf32>
    tpu.vector_store %arg6[%c0_9, %c32], %7 {strides = array<i32>} : memref<64x48xf32, #tpu.memory_space<vmem>>, vector<64x16xf32>,
    %c0_10 = arith.constant 0 : index
    %c0_11 = arith.constant 0 : index
    %9 = vector.load %arg2[%c0_10, %c0_11] : memref<57x128xf32, #tpu.memory_space<vmem>>, vector<48x128xf32>
    %c48 = arith.constant 48 : index
    %c0_12 = arith.constant 0 : index
    %10 = vector.load %arg2[%c48, %c0_12] : memref<57x128xf32, #tpu.memory_space<vmem>>, vector<8x128xf32>
    %c56 = arith.constant 56 : index
    %c0_13 = arith.constant 0 : index
    %11 = vector.load %arg2[%c56, %c0_13] : memref<57x128xf32, #tpu.memory_space<vmem>>, vector<1x128xf32>
    %c0_14 = arith.constant 0 : index
    %c0_15 = arith.constant 0 : index
    %12 = vector.load %arg6[%c0_14, %c0_15] : memref<64x48xf32, #tpu.memory_space<vmem>>, vector<64x48xf32>
    %cst = arith.constant dense<0.000000e+00> : vector<64x128xf32>
    %13 = tpu.matmul %12, %9, %cst {dimension_numbers = #tpu.dot_dimension_numbers<[1], [0], [0], [1], [0, 0, 1, 1], [], []>} : vector<64x48xf32>, vector<48x128xf32>, vector<64x128xf32> -> vector<64x128xf32>
    %14 = vector.broadcast %11 : vector<1x128xf32> to vector<64x128xf32>
    %15 = arith.addf %13, %14 : vector<64x128xf32>
    %cst_16 = arith.constant 0.000000e+00 : f32
    %16 = vector.broadcast %cst_16 : f32 to vector<64x128xf32>
    %17 = arith.maximumf %15, %16 : vector<64x128xf32>
    %18 = vector.shape_cast %17 : vector<64x128xf32> to vector<8x8x128xf32>
    %19 = vector.shape_cast %10 : vector<8x128xf32> to vector<1x8x128xf32>
    %20 = vector.broadcast %19 : vector<1x8x128xf32> to vector<8x8x128xf32>
    %21 = arith.mulf %18, %20 : vector<8x8x128xf32>
    %cst_17 = arith.constant dense<0xFF800000> : vector<8x128xf32>
    %22 = vector.multi_reduction <maximumf>, %21, %cst_17 [1] : vector<8x8x128xf32> to vector<8x128xf32>
    %c0_18 = arith.constant 0 : index
    %c0_19 = arith.constant 0 : index
    %23 = vector.load %arg3[%c0_18, %c0_19] : memref<129x256xf32, #tpu.memory_space<vmem>>, vector<128x256xf32>
    %c128 = arith.constant 128 : index
    %c0_20 = arith.constant 0 : index
    %24 = vector.load %arg3[%c128, %c0_20] : memref<129x256xf32, #tpu.memory_space<vmem>>, vector<1x256xf32>
    %cst_21 = arith.constant dense<0.000000e+00> : vector<8x256xf32>
    %25 = tpu.matmul %22, %23, %cst_21 {dimension_numbers = #tpu.dot_dimension_numbers<[1], [0], [0], [1], [0, 0, 1, 1], [], []>} : vector<8x128xf32>, vector<128x256xf32>, vector<8x256xf32> -> vector<8x256xf32>
    %26 = vector.broadcast %24 : vector<1x256xf32> to vector<8x256xf32>
    %27 = arith.addf %25, %26 : vector<8x256xf32>
    %28 = vector.extract_strided_slice %27 {offsets = [0, 0], sizes = [8, 128], strides = [1, 1]} : vector<8x256xf32> to vector<8x128xf32>
    %cst_22 = arith.constant 0.000000e+00 : f32
    %29 = vector.broadcast %cst_22 : f32 to vector<8x128xf32>
    %30 = arith.maximumf %28, %29 : vector<8x128xf32>
    %31 = vector.extract_strided_slice %27 {offsets = [0, 128], sizes = [8, 128], strides = [1, 1]} : vector<8x256xf32> to vector<8x128xf32>
    %32 = arith.negf %31 : vector<8x128xf32>
    %33 = math.exp %32 : vector<8x128xf32>
    %cst_23 = arith.constant 1.000000e+00 : f32
    %34 = vector.broadcast %cst_23 : f32 to vector<8x128xf32>
    %35 = arith.addf %34, %33 : vector<8x128xf32>
    %36 = arith.divf %34, %35 : vector<8x128xf32>
    %37 = arith.mulf %36, %30 : vector<8x128xf32>
    %cst_24 = arith.constant 1.000000e+00 : f32
    %38 = vector.broadcast %cst_24 : f32 to vector<8x128xf32>
    %39 = arith.subf %38, %36 : vector<8x128xf32>
    %40 = arith.mulf %39, %22 : vector<8x128xf32>
    %41 = arith.addf %37, %40 : vector<8x128xf32>
    %c0_25 = arith.constant 0 : index
    %c0_26 = arith.constant 0 : index
    %42 = vector.load %arg4[%c0_25, %c0_26] : memref<129x128xf32, #tpu.memory_space<vmem>>, vector<128x128xf32>
    %c128_27 = arith.constant 128 : index
    %c0_28 = arith.constant 0 : index
    %43 = vector.load %arg4[%c128_27, %c0_28] : memref<129x128xf32, #tpu.memory_space<vmem>>, vector<1x128xf32>
    %cst_29 = arith.constant dense<0.000000e+00> : vector<8x128xf32>
    %44 = tpu.matmul %41, %42, %cst_29 {dimension_numbers = #tpu.dot_dimension_numbers<[1], [0], [0], [1], [0, 0, 1, 1], [], []>} : vector<8x128xf32>, vector<128x128xf32>, vector<8x128xf32> -> vector<8x128xf32>
    %45 = vector.broadcast %43 : vector<1x128xf32> to vector<8x128xf32>
    %46 = arith.addf %44, %45 : vector<8x128xf32>
    %47 = arith.negf %46 : vector<8x128xf32>
    %48 = math.exp %47 : vector<8x128xf32>
    %cst_30 = arith.constant 1.000000e+00 : f32
    %49 = vector.broadcast %cst_30 : f32 to vector<8x128xf32>
    %50 = arith.addf %49, %48 : vector<8x128xf32>
    %51 = arith.divf %49, %50 : vector<8x128xf32>
    %c0_31 = arith.constant 0 : index
    %c0_32 = arith.constant 0 : index
    %52 = vector.load %arg5[%c0_31, %c0_32] : memref<8x128xf32, #tpu.memory_space<vmem>>, vector<8x128xf32>
    tpu.vector_store %arg5[%c0_31, %c0_32], %51 {strides = array<i32>} : memref<8x128xf32, #tpu.memory_space<vmem>>, vector<8x128xf32>,
    return
  }
  func.func @transform_0(%arg0: i32) -> (i32, i32, i32) {
    %c0_i32 = arith.constant 0 : i32
    %c0_i32_0 = arith.constant 0 : i32
    %c0_i32_1 = arith.constant 0 : i32
    return %arg0, %c0_i32, %c0_i32_0 : i32, i32, i32
  }
  func.func @transform_1(%arg0: i32) -> (i32, i32) {
    %c0_i32 = arith.constant 0 : i32
    %c0_i32_0 = arith.constant 0 : i32
    %c0_i32_1 = arith.constant 0 : i32
    return %c0_i32, %c0_i32_0 : i32, i32
  }
  func.func @transform_2(%arg0: i32) -> (i32, i32) {
    %c0_i32 = arith.constant 0 : i32
    %c0_i32_0 = arith.constant 0 : i32
    %c0_i32_1 = arith.constant 0 : i32
    return %c0_i32, %c0_i32_0 : i32, i32
  }
  func.func @transform_3(%arg0: i32) -> (i32, i32) {
    %c0_i32 = arith.constant 0 : i32
    %c0_i32_0 = arith.constant 0 : i32
    %c0_i32_1 = arith.constant 0 : i32
    return %c0_i32, %c0_i32_0 : i32, i32
  }
  func.func @transform_4(%arg0: i32) -> (i32, i32) {
    %c0_i32 = arith.constant 0 : i32
    %c0_i32_0 = arith.constant 0 : i32
    return %arg0, %c0_i32 : i32, i32
  }
}

</mosaic_0001>

<bundles_post_ra>
// kernel: tpu_custom_call.1
= control target key start
LH: loop header
LB: loop body
LE: loop exit
PB: predicated region body
PF: predicated region fallthrough
CT: control target
= control target key end

     0   :  { %9 = vsyncpa [#allocation4], 0  ;;  %s1127_s0 = inlined_call_operand.vmem [shape: f32[8,10,16], index: 0, kind: input, shape index: {}]   ;;  %s1128_s1 = inlined_call_operand.vmem [shape: f32[57,128], index: 1, kind: input, shape index: {}]   ;;  %s1129_s2 = inlined_call_operand.hbm [shape: f32[129,256], index: 2, kind: input, shape index: {}]   ;;  %s1130_s3 = inlined_call_operand.vmem [shape: f32[129,128], index: 3, kind: input, shape index: {}]   ;;  %s1131_s4 = inlined_call_operand.hbm [shape: f32[8,128], index: 4, kind: output, shape index: {}]  }
   0x1   :  { %10 = vsyncpa [#allocation5], 0  ;;  %s858_s15 = smov [#allocation3]   ;;  %s810_s19 = scalar_lea.hbm %s1129_s2, 4352 }
   0x2   :  { %s20_s16 = sshll.u32 %s858_s15, 4  ;;  %p811_p0 = scmp.ne.s32.totalorder %s1129_s2, %s810_s19  ;;  %s21_s16 = int_to_ptr.vmem [resolvable:$true] %s20_s16 }
   0x3   :  { %p814_p1 = scmp.lt.u32.totalorder %s810_s19, %s1129_s2 }
   0x5   :  { %p816_p2 = pnand %p814_p1, %p811_p0 }
   0x7   :  { %819 = shalt.err (!%p816_p2)
}
   0x8   :  { %s820_s24 = scalar_lea.vmem %s21_s16, 4352  ;;  %p825_p4 = scmp.lt.s32.totalorder %s21_s16, %s21_s16 }
   0x9   :  { %p821_p3 = scmp.ne.s32.totalorder %s21_s16, %s820_s24  ;;  %p826_p5 = scmp.lt.s32.totalorder %s820_s24, %s820_s24 }
   0xb   :  { %p827_p6 = por %p826_p5, %p825_p4 }
   0xd   :  { %p828_p7 = pnand %p827_p6, %p821_p3 }
   0xf   :  { %831 = shalt.err (!%p828_p7)
}
  0x10   :  { %s859_s25 = smov 256   ;;  %s860_s26 = smov 16  }
  0x11   :  { %26 = dma.hbm_to_vmem [thread:$0]  %s1129_s2, 4352, %s21_s16, [#allocation4], %s859_s25, %s859_s25, %s860_s26  }
  0x12   :  { %854 = dma.done.wait [#allocation4], 4352  }
  0x13   :  { %855 = vsyncadd [#allocation4], 4294962944  ;;  %v49_v0 = vld [vmem:[%s1127_s0 + $0x1] sm:$0xff]  ;;  %s861_s7 = smov 32   ;;  %v50_v2 = vld [vmem:[%s1127_s0 + $0x11] sm:$0xff]  ;;  %vm40_vm0 = vcmask 130048  }
  0x14   :  { %v98_v1 = vld [vmem:[%s1127_s0 + $0x2] sm:$0xff]  ;;  %65 = vrot.lane.b32.xlu0 %v49_v0, %s860_s26  ;;  %v99_v3 = vld [vmem:[%s1127_s0 + $0x12] sm:$0xff]  ;;  %vm89_vm1 = vcmask 261248   ;;  %vm138_vm2 = vcmask 392448   ;;  %vm167_vm3 = vcmask 392192   ;;  %vm414_vm4 = vcmask 1041409  }
  0x15   :  { %114 = vrot.lane.b32.xlu1 %v98_v1, %s861_s7  ;;  %v51_v4 = vld [vmem:[%s1127_s0 + $0x21] sm:$0xff]  ;;  %v52_v5 = vld [vmem:[%s1127_s0 + $0x31] sm:$0xff]  ;;  %vm416_vm5 = vcmask 1042434   ;;  %vm418_vm6 = vcmask 1043459   ;;  %vm420_vm7 = vcmask 1044484   ;;  %vm422_vm8 = vcmask 1045509  }
  0x16   :  { %v32_v6 = vld [vmem:[%s1127_s0] sm:$0xff]  ;;  %v148_v8 = vld [vmem:[%s1128_s1 + $0x8] sm:$0xff]  ;;  %v33_v10 = vld [vmem:[%s1127_s0 + $0x10] sm:$0xff]  ;;  %vm424_vm9 = vcmask 1046534   ;;  %vm426_vm10 = vcmask 1047559   ;;  %vm864_vm11 = vmmov 0  }
  0x17   :  { %v147_v7 = vld [vmem:[%s1128_s1] sm:$0xff]  ;;  %41 = vst.msk [vmem:[#allocation2] sm:$0xff] %vm40_vm0, %v32_v6  ;;  %v149_v11 = vld [vmem:[%s1128_s1 + $0x10] sm:$0xff]  ;;  %v150_v12 = vld [vmem:[%s1128_s1 + $0x18] sm:$0xff]  ;;  %s865_s18 = smov [#allocation6]  }
  0x18   :  { %67 = vrot.lane.b32.xlu0 %v50_v2, %s860_s26  ;;  %v726_v9 = vpack.c.bf16 %v148_v8, %v147_v7  ;;  %v100_v13 = vld [vmem:[%s1127_s0 + $0x22] sm:$0xff]  ;;  %42 = vst.msk [vmem:[#allocation2 + $0x8] sm:$0xff] %vm40_vm0, %v33_v10  ;;  %v730_v14 = vpack.c.bf16 %v150_v12, %v149_v11  ;;  %v35_v16 = vld [vmem:[%s1127_s0 + $0x30] sm:$0xff]  ;;  %v363_v61 = vld [vmem:[#allocation3 + $0x10] sm:$0xff]  ;;  %s615_s19 = sshll.u32 %s865_s18, 4  ;;  %s616_s19 = int_to_ptr.vmem [resolvable:$true] %s615_s19 }
  0x19   :  { %116 = vrot.lane.b32.xlu1 %v99_v3, %s861_s7  ;;  %v34_v15 = vld [vmem:[%s1127_s0 + $0x20] sm:$0xff]  ;;  %44 = vst.msk [vmem:[#allocation2 + $0x18] sm:$0xff] %vm40_vm0, %v35_v16  ;;  %v152_v18 = vld [vmem:[%s1128_s1 + $0x28] sm:$0xff]  ;;  %v101_v20 = vld [vmem:[%s1127_s0 + $0x32] sm:$0xff]  ;;  %s832_s20 = scalar_lea.vmem %s616_s19, 128  ;;  %p837_p9 = scmp.lt.s32.totalorder %s616_s19, %s616_s19 }
  0x1a   :  { %v151_v17 = vld [vmem:[%s1128_s1 + $0x20] sm:$0xff]  ;;  %43 = vst.msk [vmem:[#allocation2 + $0x10] sm:$0xff] %vm40_vm0, %v34_v15  ;;  %727 = vmatprep.subr.bf16.mxu0 %v726_v9  ;;  %v37_v21 = vld [vmem:[%s1127_s0 + $0x50] sm:$0xff]  ;;  %v361_v60 = vld [vmem:[#allocation3] sm:$0xff]  ;;  %p833_p8 = scmp.ne.s32.totalorder %s616_s19, %s832_s20  ;;  %p838_p10 = scmp.lt.s32.totalorder %s832_s20, %s832_s20 }
  0x1b   :  { %v36_v19 = vld [vmem:[%s1127_s0 + $0x40] sm:$0xff]  ;;  %729 = vmatpush3.bf16.msra.mxu0 %v726_v9  ;;  %46 = vst.msk [vmem:[#allocation2 + $0x28] sm:$0xff] %vm40_vm0, %v37_v21  ;;  %v39_v23 = vld [vmem:[%s1127_s0 + $0x70] sm:$0xff]  ;;  %v734_v24 = vpack.c.bf16 %v152_v18, %v151_v17  ;;  %v740_v62 = vpack.c.bf16 %v363_v61, %v361_v60  ;;  %v365_v2 = vld [vmem:[#allocation3 + $0x20] sm:$0xff] }
  0x1c   :  { %69 = vrot.lane.b32.xlu0 %v51_v4, %s860_s26  ;;  %45 = vst.msk [vmem:[#allocation2 + $0x20] sm:$0xff] %vm40_vm0, %v36_v19  ;;  %v38_v22 = vld [vmem:[%s1127_s0 + $0x60] sm:$0xff]  ;;  %731 = vmatprep.subr.bf16.mxu0 %v730_v14  ;;  %48 = vst.msk [vmem:[#allocation2 + $0x38] sm:$0xff] %vm40_vm0, %v39_v23  ;;  %v54_v26 = vld [vmem:[%s1127_s0 + $0x51] sm:$0xff]  ;;  %p839_p11 = por %p838_p10, %p837_p9 }
  0x1d   :  { %71 = vrot.lane.b32.xlu1 %v52_v5, %s860_s26  ;;  %47 = vst.msk [vmem:[#allocation2 + $0x30] sm:$0xff] %vm40_vm0, %v38_v22  ;;  %v53_v25 = vld [vmem:[%s1127_s0 + $0x41] sm:$0xff]  ;;  %v103_v28 = vld [vmem:[%s1127_s0 + $0x52] sm:$0xff] }
  0x1e   :  { %v102_v27 = vld [vmem:[%s1127_s0 + $0x42] sm:$0xff]  ;;  %v56_v30 = vld [vmem:[%s1127_s0 + $0x71] sm:$0xff]  ;;  %p840_p12 = pnand %p839_p11, %p833_p8 }
  0x1f   :  { %733 = vmatpush3.bf16.msra.mxu0 %v730_v14  ;;  %v55_v29 = vld [vmem:[%s1127_s0 + $0x61] sm:$0xff]  ;;  %v105_v32 = vld [vmem:[%s1127_s0 + $0x72] sm:$0xff] }
  0x20   :  { %118 = vrot.lane.b32.xlu0 %v100_v13, %s861_s7  ;;  %735 = vmatprep.subr.bf16.mxu0 %v734_v24  ;;  %v104_v31 = vld [vmem:[%s1127_s0 + $0x62] sm:$0xff]  ;;  %v362_v57 = vld [vmem:[#allocation3 + $0x8] sm:$0xff]  ;;  %v367_v3 = vld [vmem:[#allocation3 + $0x30] sm:$0xff] }
  0x21   :  { %120 = vrot.lane.b32.xlu1 %v101_v20, %s861_s7  ;;  %v364_v58 = vld [vmem:[#allocation3 + $0x18] sm:$0xff]  ;;  %v366_v63 = vld [vmem:[#allocation3 + $0x28] sm:$0xff]  ;;  %v744_v4 = vpack.c.bf16 %v367_v3, %v365_v2  ;;  %v369_v8 = vld [vmem:[#allocation3 + $0x40] sm:$0xff] }
  0x22   :  { %v738_v59 = vpack.c.bf16 %v364_v58, %v362_v57  ;;  %v368_v0 = vld [vmem:[#allocation3 + $0x38] sm:$0xff]  ;;  %v370_v5 = vld [vmem:[#allocation3 + $0x48] sm:$0xff]  ;;  %v371_v9 = vld [vmem:[#allocation3 + $0x50] sm:$0xff] }
  0x23   :  { %737 = vmatpush3.bf16.msra.mxu0 %v734_v24  ;;  %v742_v1 = vpack.c.bf16 %v368_v0, %v366_v63  ;;  %v372_v6 = vld [vmem:[#allocation3 + $0x58] sm:$0xff]  ;;  %v748_v10 = vpack.c.bf16 %v371_v9, %v369_v8  ;;  %v374_v11 = vld [vmem:[#allocation3 + $0x68] sm:$0xff]  ;;  %v373_v14 = vld [vmem:[#allocation3 + $0x60] sm:$0xff] }
  0x24   :  { %73 = vrot.lane.b32.xlu0 %v53_v25, %s860_s26  ;;  %739 = vmatprep.subr.bf16.mxu1 %v738_v59  ;;  %v746_v7 = vpack.c.bf16 %v372_v6, %v370_v5  ;;  %v376_v12 = vld [vmem:[#allocation3 + $0x78] sm:$0xff]  ;;  %v375_v15 = vld [vmem:[#allocation3 + $0x70] sm:$0xff]  ;;  %v378_v17 = vld [vmem:[#allocation3 + $0x88] sm:$0xff] }
  0x25   :  { %75 = vrot.lane.b32.xlu1 %v54_v26, %s860_s26  ;;  %741 = vmatpush1.bf16.msra.mxu1 %v740_v62  ;;  %v750_v13 = vpack.c.bf16 %v376_v12, %v374_v11  ;;  %v752_v16 = vpack.c.bf16 %v375_v15, %v373_v14  ;;  %v380_v18 = vld [vmem:[#allocation3 + $0x98] sm:$0xff]  ;;  %v377_v20 = vld [vmem:[#allocation3 + $0x80] sm:$0xff]  ;;  %v379_v21 = vld [vmem:[#allocation3 + $0x90] sm:$0xff] }
  0x26   :  { %743 = vmatprep.subr.bf16.mxu1 %v742_v1  ;;  %v754_v19 = vpack.c.bf16 %v380_v18, %v378_v17  ;;  %v756_v22 = vpack.c.bf16 %v379_v21, %v377_v20  ;;  %v382_v23 = vld [vmem:[#allocation3 + $0xa8] sm:$0xff]  ;;  %v384_v24 = vld [vmem:[#allocation3 + $0xb8] sm:$0xff]  ;;  %v381_v26 = vld [vmem:[#allocation3 + $0xa0] sm:$0xff] }
  0x27   :  { %v758_v25 = vpack.c.bf16 %v384_v24, %v382_v23 }
  0x28   :  { %122 = vrot.lane.b32.xlu0 %v102_v27, %s861_s7  ;;  %v383_v27 = vld [vmem:[#allocation3 + $0xb0] sm:$0xff] }
  0x29   :  { %124 = vrot.lane.b32.xlu1 %v103_v28, %s861_s7  ;;  %745 = vmatpush1.bf16.msra.mxu1 %v744_v4  ;;  %v760_v28 = vpack.c.bf16 %v383_v27, %v381_v26 }
  0x2a   :  { %747 = vmatprep.subr.bf16.mxu1 %v746_v7 }
  0x2c   :  { %77 = vrot.lane.b32.xlu0 %v55_v29, %s860_s26  ;;  %v386_v29 = vld [vmem:[#allocation3 + $0xc8] sm:$0xff] }
  0x2d   :  { %79 = vrot.lane.b32.xlu1 %v56_v30, %s860_s26  ;;  %749 = vmatpush1.bf16.msra.mxu1 %v748_v10  ;;  %v388_v30 = vld [vmem:[#allocation3 + $0xd8] sm:$0xff] }
  0x2e   :  { %751 = vmatprep.subr.bf16.mxu1 %v750_v13 }
  0x30   :  { %126 = vrot.lane.b32.xlu0 %v104_v31, %s861_s7  ;;  %v762_v31 = vpack.c.bf16 %v388_v30, %v386_v29 }
  0x31   :  { %128 = vrot.lane.b32.xlu1 %v105_v32, %s861_s7  ;;  %753 = vmatpush1.bf16.msra.mxu1 %v752_v16  ;;  %v385_v32 = vld [vmem:[#allocation3 + $0xc0] sm:$0xff] }
  0x32   :  { %755 = vmatprep.subr.bf16.mxu1 %v754_v19 }
  0x35   :  { %757 = vmatpush1.bf16.msra.mxu1 %v756_v22 }
  0x36   :  { %759 = vmatprep.subr.bf16.mxu1 %v758_v25 }
  0x39   :  { %761 = vmatpush1.bf16.msra.mxu1 %v760_v28 }
  0x3a   :  { %763 = vmatprep.subr.bf16.mxu1 %v762_v31 }
  0x86   :  { %v66_v33 = vpop.permute.xlu0 %65 }
  0x87   :  { %v115_v34 = vpop.permute.xlu1 %114  ;;  %90 = vst.msk [vmem:[#allocation2] sm:$0xff] %vm89_vm1, %v66_v33  ;;  %v387_v33 = vld [vmem:[#allocation3 + $0xd0] sm:$0xff] }
  0x88   :  { %139 = vst.msk [vmem:[#allocation2] sm:$0xff] %vm138_vm2, %v115_v34  ;;  %v764_v34 = vpack.c.bf16 %v387_v33, %v385_v32 }
  0x8a   :  { %v68_v35 = vpop.permute.xlu0 %67  ;;  %765 = vmatpush1.bf16.msra.mxu1 %v764_v34 }
  0x8b   :  { %v117_v36 = vpop.permute.xlu1 %116  ;;  %91 = vst.msk [vmem:[#allocation2 + $0x8] sm:$0xff] %vm89_vm1, %v68_v35  ;;  %v390_v35 = vld [vmem:[#allocation3 + $0xe8] sm:$0xff] }
  0x8c   :  { %140 = vst.msk [vmem:[#allocation2 + $0x8] sm:$0xff] %vm138_vm2, %v117_v36  ;;  %v392_v36 = vld [vmem:[#allocation3 + $0xf8] sm:$0xff] }
  0x8e   :  { %v70_v37 = vpop.permute.xlu0 %69 }
  0x8f   :  { %v72_v38 = vpop.permute.xlu1 %71  ;;  %92 = vst.msk [vmem:[#allocation2 + $0x10] sm:$0xff] %vm89_vm1, %v70_v37  ;;  %v155_v39 = vld [vmem:[#allocation2] sm:$0xff]  ;;  %v766_v37 = vpack.c.bf16 %v392_v36, %v390_v35 }
  0x90   :  { %93 = vst.msk [vmem:[#allocation2 + $0x18] sm:$0xff] %vm89_vm1, %v72_v38  ;;  %679 = vmatprep.mubr.msk.f32.mxu0 %vm167_vm3, %v155_v39  ;;  %v389_v38 = vld [vmem:[#allocation3 + $0xe0] sm:$0xff]  ;;  %v391_v39 = vld [vmem:[#allocation3 + $0xf0] sm:$0xff] }
  0x91   :  { %767 = vmatprep.subr.bf16.mxu1 %v766_v37 }
  0x92   :  { %v119_v40 = vpop.permute.xlu0 %118 }
  0x93   :  { %v121_v41 = vpop.permute.xlu1 %120  ;;  %141 = vst.msk [vmem:[#allocation2 + $0x10] sm:$0xff] %vm138_vm2, %v119_v40  ;;  %v156_v42 = vld [vmem:[#allocation2 + $0x8] sm:$0xff]  ;;  %v768_v40 = vpack.c.bf16 %v391_v39, %v389_v38 }
  0x94   :  { %142 = vst.msk [vmem:[#allocation2 + $0x18] sm:$0xff] %vm138_vm2, %v121_v41  ;;  %680 = vmatmul.mubr.msk.f32.vlgmr.msra.gmra.mrb[0].mxu0 %vm167_vm3, %v156_v42  ;;  %v862_v41 = vmov 0.0   ;;  %v624_v42 = vld [vmem:[%s1128_s1 + $0x38] ss:$0 sm:$0xff] }
  0x95   :  { %493 = vmatprep.mubr.f32.mxu1 %v862_v41  ;;  %769 = vmatpush1.bf16.msra.mxu1 %v768_v40 }
  0x96   :  { %v74_v43 = vpop.permute.xlu0 %73 }
  0x97   :  { %v76_v44 = vpop.permute.xlu1 %75  ;;  %94 = vst.msk [vmem:[#allocation2 + $0x20] sm:$0xff] %vm89_vm1, %v74_v43 }
  0x98   :  { %95 = vst.msk [vmem:[#allocation2 + $0x28] sm:$0xff] %vm89_vm1, %v76_v44 }
  0x9a   :  { %v123_v45 = vpop.permute.xlu0 %122  ;;  %v157_v47 = vld [vmem:[#allocation2 + $0x10] sm:$0xff] }
  0x9b   :  { %v125_v46 = vpop.permute.xlu1 %124  ;;  %v158_v48 = vld [vmem:[#allocation2 + $0x18] sm:$0xff]  ;;  %143 = vst.msk [vmem:[#allocation2 + $0x20] sm:$0xff] %vm138_vm2, %v123_v45  ;;  %682 = vmatprep.mubr.msk.f32.mxu0 %vm167_vm3, %v157_v47 }
  0x9c   :  { %144 = vst.msk [vmem:[#allocation2 + $0x28] sm:$0xff] %vm138_vm2, %v125_v46  ;;  %683 = vmatmul.mubr.msk.f32.gmra.mrb[2].mxu0 %vm167_vm3, %v158_v48  ;;  %v1049_v46 = vld [vmem:[%s1128_s1 + $0x30] sm:$0xff] }
  0x9e   :  { %v78_v49 = vpop.permute.xlu0 %77 }
  0x9f   :  { %v80_v50 = vpop.permute.xlu1 %79  ;;  %96 = vst.msk [vmem:[#allocation2 + $0x30] sm:$0xff] %vm89_vm1, %v78_v49 }
  0xa0   :  { %97 = vst.msk [vmem:[#allocation2 + $0x38] sm:$0xff] %vm89_vm1, %v80_v50 }
  0xa2   :  { %v127_v51 = vpop.permute.xlu0 %126  ;;  %v159_v53 = vld [vmem:[#allocation2 + $0x20] sm:$0xff] }
  0xa3   :  { %v129_v52 = vpop.permute.xlu1 %128  ;;  %v160_v54 = vld [vmem:[#allocation2 + $0x28] sm:$0xff]  ;;  %145 = vst.msk [vmem:[#allocation2 + $0x30] sm:$0xff] %vm138_vm2, %v127_v51  ;;  %685 = vmatprep.mubr.msk.f32.mxu0 %vm167_vm3, %v159_v53 }
  0xa4   :  { %146 = vst.msk [vmem:[#allocation2 + $0x38] sm:$0xff] %vm138_vm2, %v129_v52  ;;  %686 = vmatmul.mubr.msk.f32.gmra.mrb[4].mxu0 %vm167_vm3, %v160_v54 }
  0xaa   :  { %v161_v55 = vld [vmem:[#allocation2 + $0x30] sm:$0xff] }
  0xab   :  { %v162_v56 = vld [vmem:[#allocation2 + $0x38] sm:$0xff]  ;;  %688 = vmatprep.mubr.msk.f32.mxu0 %vm167_vm3, %v161_v55 }
  0xac   :  { %689 = vmatmul.mubr.msk.f32.gmra.mrb[6].mxu0 %vm167_vm3, %v162_v56 }
  0xad   :  { %723 = vmatprep.mubr.msk.f32.mxu0 %vm864_vm11, %v862_v41 }
 0x167   :  { %v681_v43 = vpop.f32.mrb[0].mxu0 }
 0x168   :  { %v264_v44 = vadd.f32 %v681_v43, %v624_v42  ;;  %v258_v45 = vpop.f32.mrb[1].mxu0 }
 0x169   :  { %v259_v47 = vadd.f32 %v624_v42, %v258_v45 }
 0x16a   :  { %v298_v48 = vmax.f32 %v264_v44, 0.0 }
 0x16b   :  { %v297_v49 = vmax.f32 %v259_v47, 0.0 }
 0x16c   :  { %v306_v50 = vmul.f32 %v298_v48, %v1049_v46 }
 0x16d   :  { %v305_v51 = vmul.f32 %v297_v49, %v1049_v46 }
 0x16e   :  { %v319_v52 = vrot.slane %v306_v50, 4 }
 0x16f   :  { %v313_v53 = vrot.slane %v305_v51, 4  ;;  %v684_v54 = vpop.f32.mrb[2].mxu0 }
 0x170   :  { %v320_v55 = vmax.f32 %v306_v50, %v319_v52  ;;  %v274_v56 = vadd.f32 %v684_v54, %v624_v42  ;;  %v268_v57 = vpop.f32.mrb[3].mxu0 }
 0x171   :  { %v314_v58 = vmax.f32 %v305_v51, %v313_v53  ;;  %v269_v59 = vadd.f32 %v624_v42, %v268_v57 }
 0x172   :  { %v321_v60 = vrot.slane %v320_v55, 2  ;;  %v300_v61 = vmax.f32 %v274_v56, 0.0 }
 0x173   :  { %v315_v62 = vrot.slane %v314_v58, 2  ;;  %v299_v63 = vmax.f32 %v269_v59, 0.0 }
 0x174   :  { %v322_v0 = vmax.f32 %v320_v55, %v321_v60  ;;  %v308_v1 = vmul.f32 %v300_v61, %v1049_v46 }
 0x175   :  { %v316_v2 = vmax.f32 %v314_v58, %v315_v62  ;;  %v307_v3 = vmul.f32 %v299_v63, %v1049_v46 }
 0x176   :  { %v323_v4 = vrot.slane %v322_v0, 1  ;;  %v331_v5 = vrot.slane %v308_v1, 4 }
 0x177   :  { %v317_v6 = vrot.slane %v316_v2, 1  ;;  %v325_v7 = vrot.slane %v307_v3, 4  ;;  %v687_v8 = vpop.f32.mrb[4].mxu0 }
 0x178   :  { %v324_v9 = vmax.f32 %v322_v0, %v323_v4  ;;  %v332_v10 = vmax.f32 %v308_v1, %v331_v5  ;;  %v284_v11 = vadd.f32 %v687_v8, %v624_v42  ;;  %v278_v12 = vpop.f32.mrb[5].mxu0  ;;  %v511_v4 = vld [vmem:[%s1130_s3] sm:$0xff]  ;;  %v512_v5 = vld [vmem:[%s1130_s3 + $0x8] sm:$0xff]  ;;  %v513_v8 = vld [vmem:[%s1130_s3 + $0x10] sm:$0xff] }
 0x179   :  { %v318_v13 = vmax.f32 %v316_v2, %v317_v6  ;;  %v326_v14 = vmax.f32 %v307_v3, %v325_v7  ;;  %v279_v15 = vadd.f32 %v624_v42, %v278_v12  ;;  %v771_v6 = vpack.c.bf16 %v512_v5, %v511_v4  ;;  %v516_v12 = vld [vmem:[%s1130_s3 + $0x28] sm:$0xff] }
 0x17a   :  { %v333_v16 = vrot.slane %v332_v10, 2  ;;  %v302_v17 = vmax.f32 %v284_v11, 0.0  ;;  %v863_v7 = vmov 0.0|0.0   ;;  %v515_v11 = vld [vmem:[%s1130_s3 + $0x20] sm:$0xff] }
 0x17b   :  { %v415_v18 = vsel %vm414_vm4, %v324_v9, %v318_v13  ;;  %v327_v19 = vrot.slane %v326_v14, 2  ;;  %v301_v20 = vmax.f32 %v279_v15, 0.0  ;;  %770 = vmatprep.subr.bf16.mxu0 %v863_v7  ;;  %v514_v9 = vld [vmem:[%s1130_s3 + $0x18] sm:$0xff]  ;;  %v777_v13 = vpack.c.bf16 %v516_v12, %v515_v11 }
 0x17c   :  { %v334_v21 = vmax.f32 %v332_v10, %v333_v16  ;;  %v310_v22 = vmul.f32 %v302_v17, %v1049_v46  ;;  %772 = vmatpush3.bf16.msra.mxu0 %v771_v6  ;;  %v774_v10 = vpack.c.bf16 %v514_v9, %v513_v8  ;;  %v518_v15 = vld [vmem:[%s1130_s3 + $0x38] sm:$0xff]  ;;  %v519_v17 = vld [vmem:[%s1130_s3 + $0x40] sm:$0xff] }
 0x17d   :  { %v328_v23 = vmax.f32 %v326_v14, %v327_v19  ;;  %v309_v24 = vmul.f32 %v301_v20, %v1049_v46  ;;  %773 = vmatprep.subr.bf16.mxu0 %v863_v7  ;;  %v517_v14 = vld [vmem:[%s1130_s3 + $0x30] sm:$0xff] }
 0x17e   :  { %v335_v25 = vrot.slane %v334_v21, 1  ;;  %v343_v26 = vrot.slane %v310_v22, 4  ;;  %v780_v16 = vpack.c.bf16 %v518_v15, %v517_v14  ;;  %v521_v20 = vld [vmem:[%s1130_s3 + $0x50] sm:$0xff] }
 0x17f   :  { %v329_v27 = vrot.slane %v328_v23, 1  ;;  %v337_v28 = vrot.slane %v309_v24, 4  ;;  %v690_v29 = vpop.f32.mrb[6].mxu0 }
 0x180   :  { %v344_v30 = vmax.f32 %v310_v22, %v343_v26  ;;  %v294_v31 = vadd.f32 %v690_v29, %v624_v42  ;;  %v288_v32 = vpop.f32.mrb[7].mxu0  ;;  %v336_v36 = vmax.f32 %v334_v21, %v335_v25  ;;  %775 = vmatpush3.bf16.msra.mxu0 %v774_v10  ;;  %v522_v21 = vld [vmem:[%s1130_s3 + $0x58] sm:$0xff]  ;;  %v525_v26 = vld [vmem:[%s1130_s3 + $0x70] sm:$0xff]  ;;  %v396_v29 = vlaneseq }
 0x181   :  { %v330_v33 = vmax.f32 %v328_v23, %v329_v27  ;;  %v338_v34 = vmax.f32 %v309_v24, %v337_v28  ;;  %v289_v35 = vadd.f32 %v624_v42, %v288_v32  ;;  %776 = vmatprep.subr.bf16.mxu0 %v863_v7  ;;  %v786_v22 = vpack.c.bf16 %v522_v21, %v521_v20  ;;  %v523_v23 = vld [vmem:[%s1130_s3 + $0x60] sm:$0xff]  ;;  %v524_v24 = vld [vmem:[%s1130_s3 + $0x68] sm:$0xff]  ;;  %v526_v27 = vld [vmem:[%s1130_s3 + $0x78] sm:$0xff] }
 0x182   :  { %v345_v37 = vrot.slane %v344_v30, 2  ;;  %v304_v38 = vmax.f32 %v294_v31, 0.0  ;;  %v789_v25 = vpack.c.bf16 %v524_v24, %v523_v23  ;;  %v792_v28 = vpack.c.bf16 %v526_v27, %v525_v26  ;;  %v394_v32 = vld [vmem:[#allocation3 + $0x100] ss:$8 sm:$0x3] }
 0x183   :  { %v339_v39 = vrot.slane %v338_v34, 2  ;;  %v303_v40 = vmax.f32 %v289_v35, 0.0  ;;  %v417_v43 = vsel %vm416_vm5, %v330_v33, %v415_v18  ;;  %v520_v18 = vld [vmem:[%s1130_s3 + $0x48] sm:$0xff] }
 0x184   :  { %v346_v44 = vmax.f32 %v344_v30, %v345_v37  ;;  %v312_v45 = vmul.f32 %v304_v38, %v1049_v46  ;;  %v419_v47 = vsel %vm418_vm6, %v336_v36, %v417_v43  ;;  %778 = vmatpush3.bf16.msra.mxu0 %v777_v13  ;;  %v783_v19 = vpack.c.bf16 %v520_v18, %v519_v17 }
 0x185   :  { %v340_v48 = vmax.f32 %v338_v34, %v339_v39  ;;  %v311_v49 = vmul.f32 %v303_v40, %v1049_v46  ;;  %779 = vmatprep.subr.bf16.mxu0 %v863_v7  ;;  %v397_v30 = vshrl.u32 %v396_v29, 7 }
 0x186   :  { %v347_v50 = vrot.slane %v346_v44, 1  ;;  %v355_v51 = vrot.slane %v312_v45, 4 }
 0x187   :  { %v341_v52 = vrot.slane %v340_v48, 1  ;;  %v349_v53 = vrot.slane %v311_v49, 4  ;;  %v402_v31 = vsub.s32 1, %v397_v30  ;;  %v398_v39 = vsub.s32 0, %v397_v30 }
 0x188   :  { %v356_v54 = vmax.f32 %v312_v45, %v355_v51  ;;  %v348_v56 = vmax.f32 %v346_v44, %v347_v50  ;;  %781 = vmatpush3.bf16.msra.mxu0 %v780_v16  ;;  %v634_v51 = vld [vmem:[%s1130_s3 + $0x80] ss:$0 sm:$0xff] }
 0x189   :  { %v342_v42 = vmax.f32 %v340_v48, %v341_v52  ;;  %v350_v55 = vmax.f32 %v311_v49, %v349_v53  ;;  %782 = vmatprep.subr.bf16.mxu0 %v863_v7  ;;  %v403_v33 = vrot.slane %v394_v32, %v402_v31  ;;  %v399_v43 = vrot.slane %v394_v32, %v398_v39 }
 0x18a   :  { %v357_v57 = vrot.slane %v356_v54, 2 }
 0x18b   :  { %v351_v58 = vrot.slane %v350_v55, 2  ;;  %v421_v59 = vsel %vm420_vm7, %v342_v42, %v419_v47 }
 0x18c   :  { %v358_v60 = vmax.f32 %v356_v54, %v357_v57  ;;  %v423_v61 = vsel %vm422_vm8, %v348_v56, %v421_v59  ;;  %784 = vmatpush3.bf16.msra.mxu0 %v783_v19 }
 0x18d   :  { %v352_v62 = vmax.f32 %v350_v55, %v351_v58  ;;  %785 = vmatprep.subr.bf16.mxu0 %v863_v7 }
 0x18e   :  { %v359_v63 = vrot.slane %v358_v60, 1 }
 0x18f   :  { %v353_v0 = vrot.slane %v352_v62, 1 }
 0x190   :  { %v360_v1 = vmax.f32 %v358_v60, %v359_v63  ;;  %787 = vmatpush3.bf16.msra.mxu0 %v786_v22 }
 0x191   :  { %v354_v46 = vmax.f32 %v352_v62, %v353_v0  ;;  %788 = vmatprep.subr.bf16.mxu0 %v863_v7 }
 0x193   :  { %v425_v2 = vsel %vm424_vm9, %v354_v46, %v423_v61 }
 0x194   :  { %v1059_v3 = vsel %vm426_vm10, %v360_v1, %v425_v2  ;;  %790 = vmatpush3.bf16.msra.mxu0 %v789_v25 }
 0x195   :  { %494 = vmatmul.mubr.f32.vlgmr.msra.gmra.mrb[0].mxu1 %v1059_v3  ;;  %791 = vmatprep.subr.bf16.mxu0 %v863_v7 }
 0x198   :  { %793 = vmatpush3.bf16.msra.mxu0 %v792_v28 }
 0x268   :  { %v495_v34 = vpop.f32.mrb[0].mxu1 }
 0x269   :  { %v497_v35 = vpop.f32.mrb[1].mxu1  ;;  %v496_v44 = vadd.f32 %v495_v34, %v399_v43 }
 0x26a   :  { %v498_v36 = vadd.f32 %v497_v35, %v403_v33 }
 0x26b   :  { %v500_v45 = vmax.f32 %v496_v44, 0.0 }
 0x26c   :  { %v633_v37 = vmul.f32 -1.442695, %v498_v36 }
 0x26e   :  { %802 = vpow2.f32 %v633_v37 }
 0x278   :  { %v803_v38 = vpop.eup %802 }
 0x279   :  { %v504_v40 = vadd.f32 1.0, %v803_v38 }
 0x27b   :  { %804 = vrcp.f32 %v504_v40 }
 0x285   :  { %v805_v47 = vpop.eup %804 }
 0x286   :  { %v508_v41 = vsub.f32 1.0, %v805_v47  ;;  %v507_v48 = vmul.f32 %v805_v47, %v500_v45 }
 0x288   :  { %v509_v49 = vmul.f32 %v508_v41, %v1059_v3 }
 0x28a   :  { %v510_v50 = vadd.f32 %v509_v49, %v507_v48 }
 0x28c   :  { %724 = vmatmul.mubr.f32.vlgmr.msra.gmra.mrb[8].mxu0 %v510_v50 }
 0x35f   :  { %v598_v52 = vpop.f32.mrb[8].mxu0 }
 0x360   :  { %v599_v53 = vadd.f32 %v634_v51, %v598_v52  ;;  %v725_v54 = vpop.f32.mrb[9].mxu0 }
 0x362   :  { %v635_v42 = vmul.f32 -1.442695, %v599_v53 }
 0x364   :  { %806 = vpow2.f32 %v635_v42 }
 0x36e   :  { %v807_v55 = vpop.eup %806 }
 0x36f   :  { %v605_v56 = vadd.f32 1.0, %v807_v55 }
 0x371   :  { %808 = vrcp.f32 %v605_v56 }
 0x37b   :  { %v809_v57 = vpop.eup %808 }
 0x37c   :  { %608 = vst [vmem:[#allocation6] sm:$0xff] %v809_v57 }
 0x37d   :  { %843 = shalt.err (!%p840_p12)
}
 0x37e   :  { %s844_s22 = scalar_lea.hbm %s1131_s4, 128 }
 0x37f   :  { %p845_p13 = scmp.ne.s32.totalorder %s1131_s4, %s844_s22  ;;  %p848_p0 = scmp.lt.u32.totalorder %s844_s22, %s1131_s4 }
 0x381   :  { %p850_p1 = pnand %p848_p0, %p845_p13 }
 0x383   :  { %853 = shalt.err (!%p850_p1)
}
 0x384   :  { %618 = dma.vmem_to_hbm [thread:$0]  %s616_s19, 128, %s1131_s4, [#allocation5]  }
 0x385   :  { %856 = dma.done.wait [#allocation5], 128  }
 0x386   :  { %857 = vsyncadd [#allocation5], 4294967168 }
 0x387   :  { %622 = vsyncpa [#allocation4], 1 }
 0x388   :  { %623 = vsyncpa [#allocation5], 1 }

</bundles_post_ra>
